<compile_context>
chip_gen: v7x
topology: tpu7x:2x2x1
jax: 0.10.0
libtpu: 0.0.40
codegen_flags: <defaults>
</compile_context>

<pallas_src>
import jax
import jax.numpy as jnp
from jax.experimental import pallas as pl
from jax.experimental.pallas import tpu as pltpu


# ------------------------------- helpers ----------------------------------- #

def _round_up(x, m):
    return ((x + m - 1) // m) * m


def _pad2(a, rows, cols):
    return jnp.pad(a, ((0, rows - a.shape[0]), (0, cols - a.shape[1])))


def _pick_tm(np_, h2):
    """Largest row-tile whose full-row-strip footprint stays well under the
    smallest default scoped-VMEM budget (16 MiB on v5e, 32 MiB on v6e/v7x)."""
    budget = 12 * 1024 * 1024
    for tm in (1024, 512, 256, 128):
        if np_ % tm:
            continue
        foot = (2 * tm * np_ * 2        # A strip bf16, double-buffered
                + 2 * np_ * h2 * 2      # resident slab bf16 (2 buffers)
                + 2 * tm * h2 * 4       # z tile f32 (2 buffers)
                + 2 * 8 * h2 * 4        # psum tile
                + h2 * 4)               # bias
        if foot <= budget:
            return tm
    # TODO(synk): very large graphs (Np >> 16k) need a k-tiled contraction
    # path; full-row strips are used here since the module's loader caps the
    # batch at 2000 nodes.
    return 128


# ----------------------------- Pallas kernels ------------------------------ #

def _xw_kernel(x_ref, w_ref, o_ref):
    # Feature transform for both encoders at once: X @ [W1 | W2]
    o_ref[...] = jnp.dot(x_ref[...], w_ref[...],
                         preferred_element_type=jnp.float32).astype(o_ref.dtype)


def xw_matmul(x_pad, w_cat, *, tm):
    """x_pad: [Np, Fp] bf16, w_cat: [Fp, 2*half] bf16 -> [Np, 2*half] bf16."""
    np_, fp = x_pad.shape
    h2 = w_cat.shape[1]
    return pl.pallas_call(
        _xw_kernel,
        out_shape=jax.ShapeDtypeStruct((np_, h2), jnp.bfloat16),
        grid=(np_ // tm,),
        in_specs=[
            pl.BlockSpec((tm, fp), lambda i: (i, 0)),
            pl.BlockSpec((fp, h2), lambda i: (0, 0)),
        ],
        out_specs=pl.BlockSpec((tm, h2), lambda i: (i, 0)),
        compiler_params=pltpu.CompilerParams(
            dimension_semantics=("parallel",)),
    )(x_pad, w_cat)


def _gcn_agg_kernel(n_ref, alpha_ref, a_ref, s_ref, b_ref, z_ref, psum_ref):
    # One row tile of PReLU(A @ S + b), S = [XW_clean | XW_corrupt] resident.
    b = pl.program_id(0)          # which adjacency / encoder
    i = pl.program_id(1)          # row tile
    tm = a_ref.shape[0]

    h = jnp.dot(a_ref[...], s_ref[...],
                preferred_element_type=jnp.float32) + b_ref[...]
    alpha = alpha_ref[b]          # PReLU slope from SMEM
    h = jnp.where(h > 0, h, alpha * h)
    z_ref[...] = h.astype(z_ref.dtype)

    # Fused readout prep: per-row-tile column sums over *valid* rows only
    # (padded rows masked out), stored in sublane 0 of an (8, h2) block.
    rows = i * tm + jax.lax.broadcasted_iota(jnp.int32, (tm, 1), 0)
    masked = jnp.where(rows < n_ref[0], h, 0.0)
    col_sum = jnp.sum(masked, axis=0, keepdims=True)          # [1, h2]
    sub = jax.lax.broadcasted_iota(jnp.int32, (8, 1), 0)
    psum_ref[...] = jnp.where(sub == 0, col_sum, 0.0)


def gcn_aggregate(a_stack, slab_stack, bias_stack, alpha_arr, n_arr, *, tm):
    """a_stack: [2, Np, Np] bf16, slab_stack: [2, Np, h2] bf16,
    bias_stack: [2, 1, h2] f32, alpha_arr: f32[2] (SMEM), n_arr: int32[1].
    Returns z: [2, Np, h2] f32 and per-row-tile partial column sums."""
    nb, np_, _ = a_stack.shape
    h2 = slab_stack.shape[2]
    n_row_tiles = np_ // tm
    z, psum = pl.pallas_call(
        _gcn_agg_kernel,
        out_shape=(
            jax.ShapeDtypeStruct((nb, np_, h2), jnp.float32),
            jax.ShapeDtypeStruct((nb, 8 * n_row_tiles, h2), jnp.float32),
        ),
        grid=(nb, n_row_tiles),
        in_specs=[
            pl.BlockSpec(memory_space=pltpu.MemorySpace.SMEM),   # n
            pl.BlockSpec(memory_space=pltpu.MemorySpace.SMEM),   # PReLU slopes
            pl.BlockSpec((None, tm, np_), lambda b, i: (b, i, 0)),   # A strip
            pl.BlockSpec((None, np_, h2), lambda b, i: (b, 0, 0)),   # slab
            pl.BlockSpec((None, 1, h2), lambda b, i: (b, 0, 0)),     # bias
        ],
        out_specs=(
            pl.BlockSpec((None, tm, h2), lambda b, i: (b, i, 0)),
            pl.BlockSpec((None, 8, h2), lambda b, i: (b, i, 0)),
        ),
        compiler_params=pltpu.CompilerParams(
            dimension_semantics=("parallel", "parallel"),
            vmem_limit_bytes=32 * 1024 * 1024),
    )(n_arr, alpha_arr, a_stack, slab_stack, bias_stack)
    return z, psum


def _project_kernel(n_ref, ps_ref, wpt_ref, bp_ref, g_ref):
    # g = sigmoid(mean(z, axis=0)) @ Wp.T + bp for BOTH encoders in one dot.
    col_sum = jnp.sum(ps_ref[...], axis=1)                     # [2, h2]
    mean = col_sum / n_ref[0].astype(jnp.float32)
    g_ref[...] = (jnp.dot(jax.nn.sigmoid(mean), wpt_ref[...],
                          preferred_element_type=jnp.float32) + bp_ref[...])


def project_readout(psum, n_arr, wpt_pad, bp_pad):
    """psum: [2, 8*n_row_tiles, h2] f32, wpt_pad: [h2, hp_out] (Wp.T
    zero-padded over the full slab width), bp_pad: [1, hp_out].
    Returns [2, hp_out] f32."""
    nb, r, h2 = psum.shape
    hp_out = wpt_pad.shape[1]
    return pl.pallas_call(
        _project_kernel,
        out_shape=jax.ShapeDtypeStruct((nb, hp_out), jnp.float32),
        grid=(1,),
        in_specs=[
            pl.BlockSpec(memory_space=pltpu.MemorySpace.SMEM),
            pl.BlockSpec((nb, r, h2), lambda i: (0, 0, 0)),
            pl.BlockSpec((h2, hp_out), lambda i: (0, 0)),
            pl.BlockSpec((1, hp_out), lambda i: (0, 0)),
        ],
        out_specs=pl.BlockSpec((nb, hp_out), lambda i: (0, 0)),
        compiler_params=pltpu.CompilerParams(
            dimension_semantics=("arbitrary",)),
    )(n_arr, psum, wpt_pad, bp_pad)


# --------------------------------- Glue ------------------------------------ #

def gcn_normalize(adj):
    """Add self-loops and symmetrically normalize: D^-1/2 (A+I) D^-1/2."""
    n = adj.shape[0]
    a = adj + jnp.eye(n, dtype=adj.dtype)
    deg = jnp.sum(a, axis=1)
    d_inv_sqrt = jnp.where(deg > 0, 1.0 / jnp.sqrt(deg), 0.0)
    return a * d_inv_sqrt[:, None] * d_inv_sqrt[None, :]


def ppr_diffusion(a_norm, alpha=0.2):
    """Dense closed-form PPR diffusion: alpha * (I - (1-alpha) A)^-1 (solve)."""
    n = a_norm.shape[0]
    eye = jnp.eye(n, dtype=a_norm.dtype)
    return jnp.linalg.solve(eye - (1.0 - alpha) * a_norm, alpha * eye)


def forward(params, x, a_norm, switch=False):
    """Mirrors Encoder_Neighborlaoder.forward.
    Returns (z1, z2, g1, g2, z1n, z2n, n_id_recorder, batch_size)."""
    n, f = x.shape
    h = params["w1"].shape[1]

    half = _round_up(h, 64)            # per-encoder lane width
    h2 = 2 * half                      # [clean | corrupt] slab width (mult of 128)
    hp_out = _round_up(h, 128)
    fp = _round_up(f, 128)
    np_ = _round_up(n, 128)
    tm = _pick_tm(np_, h2)

    # augmentations: aug1 = Identity, aug2 = PPRDiffusion(alpha=0.2)
    # (switch=True also selects PPRDiffusion, which is identical here)
    a1 = a_norm
    a2 = ppr_diffusion(a_norm, alpha=0.2)

    # pad & cast the bandwidth-dominant operands to bf16 (f32 accumulation)
    a_stack = jnp.stack([_pad2(a1, np_, np_),
                         _pad2(a2, np_, np_)]).astype(jnp.bfloat16)
    xp = _pad2(x, np_, fp).astype(jnp.bfloat16)

    w_cat = jnp.concatenate([_pad2(params["w1"], fp, half),
                             _pad2(params["w2"], fp, half)],
                            axis=1).astype(jnp.bfloat16)

    # one pass over X for both encoders' feature transforms
    xw12 = xw_matmul(xp, w_cat, tm=tm)                   # [Np, 2*half] bf16
    xw1, xw2 = xw12[:, :half], xw12[:, half:]

    # corruption(): deterministic row permutation (seed 2024);
    # (P X) W == P (X W), so permute the already-transformed features.
    pkey1, pkey2 = jax.random.split(jax.random.PRNGKey(2024))
    tail = jnp.arange(n, np_, dtype=jnp.int32)
    perm1 = jnp.concatenate(
        [jax.random.permutation(pkey1, n).astype(jnp.int32), tail])
    perm2 = jnp.concatenate(
        [jax.random.permutation(pkey2, n).astype(jnp.int32), tail])

    # [clean | corrupted] slabs, both adjacencies stacked for one fused call
    slab_stack = jnp.stack([
        jnp.concatenate([xw1, jnp.take(xw1, perm1, axis=0)], axis=1),
        jnp.concatenate([xw2, jnp.take(xw2, perm2, axis=0)], axis=1),
    ])                                                    # [2, Np, h2] bf16

    b1 = _pad2(params["b1"], 1, half)
    b2 = _pad2(params["b2"], 1, half)
    bias_stack = jnp.stack([jnp.concatenate([b1, b1], axis=1),
                            jnp.concatenate([b2, b2], axis=1)])  # [2,1,h2] f32
    alpha_arr = jnp.concatenate([params["alpha1"], params["alpha2"]])  # f32[2]
    n_arr = jnp.array([n], jnp.int32)

    z_all, psum = gcn_aggregate(a_stack, slab_stack, bias_stack,
                                alpha_arr, n_arr, tm=tm)

    # project readout: Wp.T zero-padded over the full slab width so padded
    # clean lanes and the entire corrupted half contribute nothing.
    wpt = _pad2(params["wp"].T, h2, hp_out)
    bp = _pad2(params["bp"], 1, hp_out)
    g_all = project_readout(psum, n_arr, wpt, bp)          # [2, hp_out]

    z1, z1n = z_all[0, :n, :h], z_all[0, :n, half:half + h]
    z2, z2n = z_all[1, :n, :h], z_all[1, :n, half:half + h]
    g1, g2 = g_all[0:1, :h], g_all[1:2, :h]

    # TODO(synk): multi-batch NeighborLoader iteration (N > 2000) with
    # per-batch CPU-side neighbor sampling is not expressible as a kernel;
    # with N < 2000 it collapses to one full-graph batch.
    batch_size = 2000
    n_id_recorder = jnp.arange(n, dtype=jnp.int32)

    return z1, z2, g1, g2, z1n, z2n, n_id_recorder, batch_size


def init_params(key, feat_dim, hidden_dim):
    ks = jax.random.split(key, 4)
    bound_enc = 1.0 / jnp.sqrt(jnp.float32(feat_dim))
    bound_proj = 1.0 / jnp.sqrt(jnp.float32(hidden_dim))
    return {
        # encoder1 (GCN layer + PReLU, single shared slope)
        "w1": jax.random.uniform(ks[0], (feat_dim, hidden_dim), jnp.float32,
                                 -bound_enc, bound_enc),
        "b1": jnp.zeros((1, hidden_dim), jnp.float32),
        "alpha1": jnp.full((1,), 0.25, jnp.float32),
        # encoder2 (GCN layer + PReLU)
        "w2": jax.random.uniform(ks[1], (feat_dim, hidden_dim), jnp.float32,
                                 -bound_enc, bound_enc),
        "b2": jnp.zeros((1, hidden_dim), jnp.float32),
        "alpha2": jnp.full((1,), 0.25, jnp.float32),
        # self.project = nn.Linear(hidden_dim, hidden_dim)
        "wp": jax.random.uniform(ks[2], (hidden_dim, hidden_dim), jnp.float32,
                                 -bound_proj, bound_proj),
        "bp": jax.random.uniform(ks[3], (1, hidden_dim), jnp.float32,
                                 -bound_proj, bound_proj),
    }


if __name__ == "__main__":
    N, F, H = 64, 32, 32  # small synthetic graph: 64 nodes, 32 feats, 32 hidden

    key = jax.random.PRNGKey(0)
    k_x, k_adj, k_params = jax.random.split(key, 3)

    x = jax.random.normal(k_x, (N, F), dtype=jnp.float32)

    # deterministic random undirected graph -> dense adjacency
    adj_rand = (jax.random.uniform(k_adj, (N, N)) < 0.1).astype(jnp.float32)
    adj = jnp.clip(adj_rand + adj_rand.T, 0.0, 1.0)
    adj = adj * (1.0 - jnp.eye(N, dtype=jnp.float32))
    a_norm = gcn_normalize(adj)

    params = init_params(k_params, F, H)

    z1, z2, g1, g2, z1n, z2n, n_id_recorder, batch_size = forward(
        params, x, a_norm, switch=False)

    jax.block_until_ready((z1, z2, g1, g2, z1n, z2n, n_id_recorder))

    assert z1.shape == (N, H) and z2.shape == (N, H)
    assert g1.shape == (1, H) and g2.shape == (1, H)
    assert z1n.shape == (N, H) and z2n.shape == (N, H)
    assert n_id_recorder.shape == (N,) and batch_size == 2000
    assert bool(jnp.all(jnp.isfinite(z1))) and bool(jnp.all(jnp.isfinite(g1)))
    assert bool(jnp.all(jnp.isfinite(z2))) and bool(jnp.all(jnp.isfinite(g2)))

    print("KERNEL_OK")
</pallas_src>

<mosaic_0001>
module attributes {stable_mosaic.version = 11 : i64} {
  func.func @_xw_kernel(%arg0: i32, %arg1: memref<128x128xbf16, #tpu.memory_space<vmem>>, %arg2: memref<128x128xbf16, #tpu.memory_space<vmem>>, %arg3: memref<128x128xbf16, #tpu.memory_space<vmem>>) attributes {dimension_semantics = [#tpu.dimension_semantics<parallel>], iteration_bounds = array<i64: 1>, scalar_prefetch = 0 : i64, scratch_operands = 0 : i64, tpu.core_type = #tpu.core_type<tc>, window_params = [{transform_indices = @transform_0, window_bounds = array<i64: 128, 128>}, {pipeline_mode = #tpu.pipeline_mode<synchronous>, transform_indices = @transform_1, window_bounds = array<i64: 128, 128>}, {transform_indices = @transform_2, window_bounds = array<i64: 128, 128>}]} {
    %c0 = arith.constant 0 : index
    %c0_0 = arith.constant 0 : index
    %0 = vector.load %arg1[%c0, %c0_0] : memref<128x128xbf16, #tpu.memory_space<vmem>>, vector<128x128xbf16>
    %c0_1 = arith.constant 0 : index
    %c0_2 = arith.constant 0 : index
    %1 = vector.load %arg2[%c0_1, %c0_2] : memref<128x128xbf16, #tpu.memory_space<vmem>>, vector<128x128xbf16>
    %cst = arith.constant dense<0.000000e+00> : vector<128x128xf32>
    %2 = tpu.matmul %0, %1, %cst {dimension_numbers = #tpu.dot_dimension_numbers<[1], [0], [0], [1], [0, 0, 1, 1], [], []>} : vector<128x128xbf16>, vector<128x128xbf16>, vector<128x128xf32> -> vector<128x128xf32>
    %3 = arith.truncf %2 : vector<128x128xf32> to vector<128x128xbf16>
    %c0_3 = arith.constant 0 : index
    %c0_4 = arith.constant 0 : index
    %4 = vector.load %arg3[%c0_3, %c0_4] : memref<128x128xbf16, #tpu.memory_space<vmem>>, vector<128x128xbf16>
    tpu.vector_store %arg3[%c0_3, %c0_4], %3 {strides = array<i32>} : memref<128x128xbf16, #tpu.memory_space<vmem>>, vector<128x128xbf16>,
    return
  }
  func.func @transform_0(%arg0: i32) -> (i32, i32) {
    %c0_i32 = arith.constant 0 : i32
    %c0_i32_0 = arith.constant 0 : i32
    return %arg0, %c0_i32 : i32, i32
  }
  func.func @transform_1(%arg0: i32) -> (i32, i32) {
    %c0_i32 = arith.constant 0 : i32
    %c0_i32_0 = arith.constant 0 : i32
    %c0_i32_1 = arith.constant 0 : i32
    return %c0_i32, %c0_i32_0 : i32, i32
  }
  func.func @transform_2(%arg0: i32) -> (i32, i32) {
    %c0_i32 = arith.constant 0 : i32
    %c0_i32_0 = arith.constant 0 : i32
    return %arg0, %c0_i32 : i32, i32
  }
}

</mosaic_0001>

<bundles_post_ra>
// kernel: tpu_custom_call.1
= control target key start
LH: loop header
LB: loop body
LE: loop exit
PB: predicated region body
PF: predicated region fallthrough
CT: control target
= control target key end

     0   :  { %7 = vsyncpa [#allocation3], 0  ;;  %s681_s0 = inlined_call_operand.hbm [shape: bf16[128,128], index: 0, kind: input, shape index: {}]   ;;  %s682_s1 = inlined_call_operand.hbm [shape: bf16[128,128], index: 1, kind: input, shape index: {}]   ;;  %s683_s2 = inlined_call_operand.hbm [shape: bf16[128,128], index: 2, kind: output, shape index: {}]  }
   0x1   :  { %8 = vsyncpa [#allocation6], 0 }
   0x2   :  { %9 = vsyncpa [#allocation4], 0  ;;  %s616_s9 = smov [#allocation2]   ;;  %s544_s13 = scalar_lea.hbm %s681_s0, 1024 }
   0x3   :  { %s15_s10 = sshll.u32 %s616_s9, 4  ;;  %p545_p0 = scmp.ne.s32.totalorder %s681_s0, %s544_s13  ;;  %s16_s10 = int_to_ptr.vmem [resolvable:$true] %s15_s10 }
   0x4   :  { %p548_p1 = scmp.lt.u32.totalorder %s544_s13, %s681_s0 }
   0x6   :  { %p550_p2 = pnand %p548_p1, %p545_p0 }
   0x8   :  { %553 = shalt.err (!%p550_p2)
}
   0x9   :  { %s554_s18 = scalar_lea.vmem %s16_s10, 1024  ;;  %p559_p4 = scmp.lt.s32.totalorder %s16_s10, %s16_s10 }
   0xa   :  { %p555_p3 = scmp.ne.s32.totalorder %s16_s10, %s554_s18  ;;  %p560_p5 = scmp.lt.s32.totalorder %s554_s18, %s554_s18 }
   0xc   :  { %p561_p6 = por %p560_p5, %p559_p4 }
   0xe   :  { %p562_p7 = pnand %p561_p6, %p555_p3 }
  0x10   :  { %565 = shalt.err (!%p562_p7)
}
  0x11   :  { %s617_s19 = smov 64   ;;  %s618_s20 = smov 4  }
  0x12   :  { %21 = dma.hbm_to_vmem [thread:$0]  %s681_s0, 1024, %s16_s10, [#allocation3], %s617_s19, %s617_s19, %s618_s20  }
  0x13   :  { %s619_s23 = smov [#allocation5]   ;;  %s566_s27 = scalar_lea.hbm %s682_s1, 1024 }
  0x14   :  { %s27_s24 = sshll.u32 %s619_s23, 4  ;;  %p567_p8 = scmp.ne.s32.totalorder %s682_s1, %s566_s27  ;;  %s28_s24 = int_to_ptr.vmem [resolvable:$true] %s27_s24 }
  0x15   :  { %p570_p9 = scmp.lt.u32.totalorder %s566_s27, %s682_s1 }
  0x17   :  { %p572_p10 = pnand %p570_p9, %p567_p8 }
  0x19   :  { %575 = shalt.err (!%p572_p10)
}
  0x1a   :  { %s576_s4 = scalar_lea.vmem %s28_s24, 1024  ;;  %p581_p12 = scmp.lt.s32.totalorder %s28_s24, %s28_s24 }
  0x1b   :  { %p577_p11 = scmp.ne.s32.totalorder %s28_s24, %s576_s4  ;;  %p582_p13 = scmp.lt.s32.totalorder %s576_s4, %s576_s4 }
  0x1d   :  { %p583_p0 = por %p582_p13, %p581_p12 }
  0x1f   :  { %p584_p1 = pnand %p583_p0, %p577_p11 }
  0x21   :  { %587 = shalt.err (!%p584_p1)
}
  0x22   :  { %33 = dma.hbm_to_vmem [thread:$0]  %s682_s1, 1024, %s28_s24, [#allocation6], %s617_s19, %s617_s19, %s618_s20  }
  0x23   :  { %610 = dma.done.wait [#allocation3], 1024  }
  0x24   :  { %611 = vsyncadd [#allocation3], 4294966272 }
  0x25   :  { %612 = dma.done.wait [#allocation6], 1024  }
  0x26   :  { %613 = vsyncadd [#allocation6], 4294966272  ;;  %v528_v0 = vld [vmem:[#allocation5] sm:$0xff]   ;;  %v529_v1 = vld [vmem:[#allocation5 + $0x8] sm:$0xff]   ;;  %s620_s1 = smov [#allocation7]  }
  0x27   :  { %475 = vmatprep.subr.bf16.mxu0 %v528_v0  ;;  %507 = vmatprep.subr.bf16.mxu1 %v528_v0  ;;  %v530_v2 = vld [vmem:[#allocation5 + $0x10] sm:$0xff]   ;;  %v531_v3 = vld [vmem:[#allocation5 + $0x18] sm:$0xff]   ;;  %v536_v4 = vld [vmem:[#allocation2] sm:$0xff]   ;;  %s351_s6 = sshll.u32 %s620_s1, 4  ;;  %s352_s6 = int_to_ptr.vmem [resolvable:$true] %s351_s6 }
  0x28   :  { %476 = vmatpush3.bf16.msra.mxu0 %v528_v0  ;;  %515 = vmatpush3.bf16.msra.mxu1 %v528_v0  ;;  %v537_v5 = vld [vmem:[#allocation2 + $0x20] sm:$0xff]   ;;  %v533_v7 = vld [vmem:[#allocation5 + $0x28] sm:$0xff]   ;;  %v534_v8 = vld [vmem:[#allocation5 + $0x30] sm:$0xff]   ;;  %s588_s7 = scalar_lea.vmem %s352_s6, 1024  ;;  %p593_p3 = scmp.lt.s32.totalorder %s352_s6, %s352_s6 }
  0x29   :  { %477 = vmatprep.subr.bf16.mxu0 %v529_v1  ;;  %508 = vmatprep.subr.bf16.mxu1 %v529_v1  ;;  %v532_v6 = vld [vmem:[#allocation5 + $0x20] sm:$0xff]   ;;  %v535_v9 = vld [vmem:[#allocation5 + $0x38] sm:$0xff]   ;;  %v538_v10 = vld [vmem:[#allocation2 + $0x8] sm:$0xff]   ;;  %p589_p2 = scmp.ne.s32.totalorder %s352_s6, %s588_s7  ;;  %p594_p4 = scmp.lt.s32.totalorder %s588_s7, %s588_s7 }
  0x2a   :  { %491 = vmatprep.mubr.bf16.mxu0 %v536_v4  ;;  %499 = vmatprep.mubr.bf16.mxu1 %v537_v5  ;;  %v539_v11 = vld [vmem:[#allocation2 + $0x28] sm:$0xff]   ;;  %v540_v12 = vld [vmem:[#allocation2 + $0x10] sm:$0xff]   ;;  %v542_v14 = vld [vmem:[#allocation2 + $0x18] sm:$0xff]  }
  0x2b   :  { %v541_v13 = vld [vmem:[#allocation2 + $0x30] sm:$0xff]   ;;  %v543_v15 = vld [vmem:[#allocation2 + $0x38] sm:$0xff]   ;;  %p595_p5 = por %p594_p4, %p593_p3 }
  0x2c   :  { %478 = vmatpush3.bf16.msra.mxu0 %v529_v1  ;;  %516 = vmatpush3.bf16.msra.mxu1 %v529_v1 }
  0x2d   :  { %479 = vmatprep.subr.bf16.mxu0 %v530_v2  ;;  %509 = vmatprep.subr.bf16.mxu1 %v530_v2  ;;  %p596_p6 = pnand %p595_p5, %p589_p2 }
  0x30   :  { %480 = vmatpush3.bf16.msra.mxu0 %v530_v2  ;;  %517 = vmatpush3.bf16.msra.mxu1 %v530_v2 }
  0x31   :  { %481 = vmatprep.subr.bf16.mxu0 %v531_v3  ;;  %510 = vmatprep.subr.bf16.mxu1 %v531_v3 }
  0x34   :  { %482 = vmatpush3.bf16.msra.mxu0 %v531_v3  ;;  %518 = vmatpush3.bf16.msra.mxu1 %v531_v3 }
  0x35   :  { %483 = vmatprep.subr.bf16.mxu0 %v532_v6  ;;  %511 = vmatprep.subr.bf16.mxu1 %v532_v6 }
  0x38   :  { %484 = vmatpush3.bf16.msra.mxu0 %v532_v6  ;;  %519 = vmatpush3.bf16.msra.mxu1 %v532_v6 }
  0x39   :  { %485 = vmatprep.subr.bf16.mxu0 %v533_v7  ;;  %512 = vmatprep.subr.bf16.mxu1 %v533_v7 }
  0x3c   :  { %486 = vmatpush3.bf16.msra.mxu0 %v533_v7  ;;  %520 = vmatpush3.bf16.msra.mxu1 %v533_v7 }
  0x3d   :  { %487 = vmatprep.subr.bf16.mxu0 %v534_v8  ;;  %513 = vmatprep.subr.bf16.mxu1 %v534_v8 }
  0x40   :  { %488 = vmatpush3.bf16.msra.mxu0 %v534_v8  ;;  %521 = vmatpush3.bf16.msra.mxu1 %v534_v8 }
  0x41   :  { %489 = vmatprep.subr.bf16.mxu0 %v535_v9  ;;  %514 = vmatprep.subr.bf16.mxu1 %v535_v9 }
  0x44   :  { %490 = vmatpush3.bf16.msra.mxu0 %v535_v9  ;;  %522 = vmatpush3.bf16.msra.mxu1 %v535_v9 }
  0x47   :  { %492 = vmatmul.mubr.bf16.vlgmr.msra.gmra.mrb[0].mxu0 %v538_v10  ;;  %500 = vmatmul.mubr.bf16.vlgmr.msra.gmra.mrb[0].mxu1 %v539_v11 }
  0x48   :  { %495 = vmatprep.mubr.bf16.mxu0 %v540_v12  ;;  %503 = vmatprep.mubr.bf16.mxu1 %v541_v13 }
  0x4f   :  { %496 = vmatmul.mubr.bf16.gmra.mrb[4].mxu0 %v542_v14  ;;  %504 = vmatmul.mubr.bf16.gmra.mrb[4].mxu1 %v543_v15 }
 0x11a   :  { %v493_v16 = vpop.f32.mrb[0].mxu0  ;;  %v501_v17 = vpop.f32.mrb[0].mxu1 }
 0x11b   :  { %v203_v18 = vpop.f32.mrb[1].mxu0  ;;  %v235_v19 = vpop.f32.mrb[1].mxu1 }
 0x11c   :  { %v494_v20 = vpop.f32.mrb[2].mxu0  ;;  %v502_v21 = vpop.f32.mrb[2].mxu1 }
 0x11d   :  { %v420_v22 = vpack.c.bf16 %v494_v20, %v493_v16  ;;  %v440_v23 = vpack.c.bf16 %v502_v21, %v501_v17  ;;  %v206_v24 = vpop.f32.mrb[3].mxu0  ;;  %v238_v25 = vpop.f32.mrb[3].mxu1 }
 0x11e   :  { %v415_v26 = vpack.c.bf16 %v206_v24, %v203_v18  ;;  %v435_v27 = vpack.c.bf16 %v238_v25, %v235_v19 }
 0x11f   :  { %452 = vst [vmem:[#allocation7 + $0x8] sm:$0xff] %v420_v22   ;;  %456 = vst [vmem:[#allocation7 + $0x28] sm:$0xff] %v440_v23  }
 0x120   :  { %416 = vst [vmem:[#allocation7] sm:$0xff] %v415_v26   ;;  %455 = vst [vmem:[#allocation7 + $0x20] sm:$0xff] %v435_v27  }
 0x122   :  { %v497_v28 = vpop.f32.mrb[4].mxu0  ;;  %v505_v29 = vpop.f32.mrb[4].mxu1 }
 0x123   :  { %v219_v30 = vpop.f32.mrb[5].mxu0  ;;  %v251_v31 = vpop.f32.mrb[5].mxu1 }
 0x124   :  { %v498_v32 = vpop.f32.mrb[6].mxu0  ;;  %v506_v33 = vpop.f32.mrb[6].mxu1 }
 0x125   :  { %v430_v34 = vpack.c.bf16 %v498_v32, %v497_v28  ;;  %v450_v35 = vpack.c.bf16 %v506_v33, %v505_v29  ;;  %v222_v36 = vpop.f32.mrb[7].mxu0  ;;  %v254_v37 = vpop.f32.mrb[7].mxu1 }
 0x126   :  { %v425_v38 = vpack.c.bf16 %v222_v36, %v219_v30  ;;  %v445_v39 = vpack.c.bf16 %v254_v37, %v251_v31 }
 0x127   :  { %454 = vst [vmem:[#allocation7 + $0x18] sm:$0xff] %v430_v34   ;;  %458 = vst [vmem:[#allocation7 + $0x38] sm:$0xff] %v450_v35  }
 0x128   :  { %453 = vst [vmem:[#allocation7 + $0x10] sm:$0xff] %v425_v38   ;;  %457 = vst [vmem:[#allocation7 + $0x30] sm:$0xff] %v445_v39  }
 0x129   :  { %599 = shalt.err (!%p596_p6)
}
 0x12a   :  { %s600_s10 = scalar_lea.hbm %s683_s2, 1024 }
 0x12b   :  { %p601_p7 = scmp.ne.s32.totalorder %s683_s2, %s600_s10  ;;  %p604_p8 = scmp.lt.u32.totalorder %s600_s10, %s683_s2 }
 0x12d   :  { %p606_p9 = pnand %p604_p8, %p601_p7 }
 0x12f   :  { %609 = shalt.err (!%p606_p9)
}
 0x130   :  { %357 = dma.vmem_to_hbm [thread:$0]  %s352_s6, 1024, %s683_s2, [#allocation4], %s617_s19, %s617_s19, %s618_s20  }
 0x131   :  { %614 = dma.done.wait [#allocation4], 1024  }
 0x132   :  { %615 = vsyncadd [#allocation4], 4294966272 }
 0x133   :  { %361 = vsyncpa [#allocation3], 1 }
 0x134   :  { %362 = vsyncpa [#allocation6], 1 }
 0x135   :  { %363 = vsyncpa [#allocation4], 1 }

</bundles_post_ra>
